<compile_context>
chip_gen: v6e
topology: v6e:2x2x1
jax: 0.10.0
libtpu: 0.0.40
codegen_flags: <defaults>
</compile_context>

<pallas_src>
import functools

import jax
import jax.numpy as jnp
from jax import lax
from jax.experimental import pallas as pl
from jax.experimental.pallas import tpu as pltpu

NEG = -1.0e30  # -inf sentinel for log-space DPs


def _round_up(x, m):
    return ((x + m - 1) // m) * m


# ----------------------------------------------------------------------------
# Pallas kernels
# ----------------------------------------------------------------------------
def _linear_kernel(x_ref, w_ref, b_ref, o_ref, *, activation, log_softmax):
    y = jnp.dot(x_ref[...], w_ref[...], preferred_element_type=jnp.float32)
    y = y + b_ref[...]
    if activation == "relu":
        y = jnp.maximum(y, 0.0)
    elif activation == "tanh":
        y = jnp.tanh(y)
    if log_softmax:
        m = jnp.max(y, axis=-1, keepdims=True)
        y = y - (m + jnp.log(jnp.sum(jnp.exp(y - m), axis=-1, keepdims=True)))
    o_ref[...] = y.astype(o_ref.dtype)


def pallas_linear(x, w, b, activation=None, log_softmax=False, tm=256):
    """x: [M, K], w: [K, N], b: [N] -> [M, N].

    Tiled over rows (M) so blocks software-pipeline and parallelize across
    TensorCores; K and N stay whole (weights resident in VMEM).
    """
    M, K = x.shape
    N = w.shape[1]
    tm = min(tm, _round_up(M, 8))            # row tile, always a multiple of 8
    Mp = _round_up(M, tm)
    if Mp != M:
        x = jnp.pad(x, ((0, Mp - M), (0, 0)))
    out = pl.pallas_call(
        functools.partial(_linear_kernel, activation=activation,
                          log_softmax=log_softmax),
        grid=(Mp // tm,),
        out_shape=jax.ShapeDtypeStruct((Mp, N), jnp.float32),
        in_specs=[
            pl.BlockSpec((tm, K), lambda i: (i, 0)),
            pl.BlockSpec((K, N), lambda i: (0, 0)),
            pl.BlockSpec((1, N), lambda i: (0, 0)),
        ],
        out_specs=pl.BlockSpec((tm, N), lambda i: (i, 0)),
        compiler_params=pltpu.CompilerParams(
            dimension_semantics=("parallel",),
            vmem_limit_bytes=32 * 1024 * 1024),
    )(x, w, b.reshape(1, N))
    return out[:M] if Mp != M else out


def _joint_kernel(tgt_ref, enc_ref, pred_ref, w_ref, b_ref,
                  lpb_ref, lpl_ref, h_scratch, trow_scratch,
                  *, tt, u1, blank):
    # tgt_ref:  SMEM int32 [B, U1]   (scalar prefetch; last column is a dummy)
    # enc_ref:  [1, TT, J]   pred_ref: [1, U1, J]
    # w_ref:    [J, V]       b_ref:    [1, V]
    # outputs:  [1, 1, U1*TT, 1]  (row r = u*TT + t_local)
    b = pl.program_id(0)
    enc = enc_ref[0]                       # [TT, J]
    pred = pred_ref[0]                     # [U1, J]

    # Build the (U1*TT, J) broadcast operand with U1 contiguous slab stores
    # (VPU only), so the vocab projection below is a single large MXU matmul.
    for u in range(u1):
        h_scratch[pl.ds(u * tt, tt), :] = jnp.tanh(enc + pred[u:u + 1, :])
        trow_scratch[pl.ds(u * tt, tt), :] = jnp.full(
            (tt, 1), tgt_ref[b, u], jnp.int32)

    h = h_scratch[...]                                           # [R, J]
    logits = jnp.dot(h, w_ref[...],
                     preferred_element_type=jnp.float32) + b_ref[...]  # [R, V]

    # Fused log_softmax over the vocab axis (EUP/XLU work hides under the MXU).
    m = jnp.max(logits, axis=-1, keepdims=True)
    lse = m + jnp.log(jnp.sum(jnp.exp(logits - m), axis=-1, keepdims=True))
    logp = logits - lse                                          # [R, V]

    # blank column + per-row target gather (one-hot select over V)
    lpb_ref[0, 0, :, :] = logp[:, blank:blank + 1]
    v_iota = lax.broadcasted_iota(jnp.int32, logp.shape, 1)
    onehot = v_iota == trow_scratch[...]
    lpl_ref[0, 0, :, :] = jnp.sum(jnp.where(onehot, logp, 0.0),
                                  axis=-1, keepdims=True)


def _pick_t_tile(T, U1, V, budget_bytes=8 * 1024 * 1024):
    """Largest multiple-of-8 divisor of T (<=128) keeping U1*tt*V*4 in budget."""
    max_tt = max(8, budget_bytes // max(1, U1 * V * 4))
    best = None
    for tt in range(8, min(T, 128) + 1, 8):
        if T % tt == 0 and tt <= max_tt:
            best = tt
    return best if best is not None else T


def pallas_joint_logprobs(enc_proj, pred_proj, w_out, b_out, targets, blank):
    """enc_proj [B,T,J], pred_proj [B,U1,J], targets [B,U] int32.

    Returns (lp_blank [B,T,U1], lp_label [B,T,U]) -- the only quantities the
    RNNT lattice DP needs -- without ever materializing [B,T,U1,V] logits.
    """
    B, T, J = enc_proj.shape
    U1 = pred_proj.shape[1]
    U = U1 - 1
    V = w_out.shape[1]
    TT = _pick_t_tile(T, U1, V)
    NT = T // TT
    R = U1 * TT

    # Pad targets to width U1 (last column is a dummy, never read by the DP).
    tgt_ext = jnp.concatenate(
        [targets.astype(jnp.int32), jnp.full((B, 1), blank, jnp.int32)], axis=1)

    grid_spec = pltpu.PrefetchScalarGridSpec(
        num_scalar_prefetch=1,
        grid=(B, NT),
        in_specs=[
            pl.BlockSpec((1, TT, J), lambda b, ti, tgt: (b, ti, 0)),
            pl.BlockSpec((1, U1, J), lambda b, ti, tgt: (b, 0, 0)),
            pl.BlockSpec((J, V), lambda b, ti, tgt: (0, 0)),
            pl.BlockSpec((1, V), lambda b, ti, tgt: (0, 0)),
        ],
        out_specs=[
            pl.BlockSpec((1, 1, R, 1), lambda b, ti, tgt: (b, ti, 0, 0)),
            pl.BlockSpec((1, 1, R, 1), lambda b, ti, tgt: (b, ti, 0, 0)),
        ],
        scratch_shapes=[pltpu.VMEM((R, J), jnp.float32),
                        pltpu.VMEM((R, 1), jnp.int32)],
    )
    lpb_flat, lpl_flat = pl.pallas_call(
        functools.partial(_joint_kernel, tt=TT, u1=U1, blank=blank),
        grid_spec=grid_spec,
        out_shape=(jax.ShapeDtypeStruct((B, NT, R, 1), jnp.float32),
                   jax.ShapeDtypeStruct((B, NT, R, 1), jnp.float32)),
        compiler_params=pltpu.CompilerParams(
            dimension_semantics=("parallel", "parallel"),
            vmem_limit_bytes=32 * 1024 * 1024),
    )(tgt_ext, enc_proj, pred_proj, w_out, b_out.reshape(1, V))

    # Tiny outputs: XLA-side reindexing is negligible (B*T*U1 floats).
    lpb = lpb_flat.reshape(B, NT, U1, TT).transpose(0, 1, 3, 2).reshape(B, T, U1)
    lpl = (lpl_flat.reshape(B, NT, U1, TT)[:, :, :U, :]
           .transpose(0, 1, 3, 2).reshape(B, T, U))
    return lpb, lpl


# ----------------------------------------------------------------------------
# Loss lattices: scans over Pallas-produced log-probabilities
# ----------------------------------------------------------------------------
def rnnt_loss(lp_blank, lp_label, t_lens, u_lens):
    """torchaudio.functional.rnnt_loss (reduction='mean') via an anti-diagonal
    wavefront lax.scan. lp_blank [B,T,U1], lp_label [B,T,U]."""
    B, T, U1 = lp_blank.shape
    # u = U can never emit a label -> pad with -inf
    lp_label_p = jnp.concatenate(
        [lp_label, jnp.full((B, T, 1), NEG, jnp.float32)], axis=2)   # [B,T,U1]

    N = T + U1 - 1                                   # number of anti-diagonals
    n_idx = jnp.arange(N)[:, None]
    u_idx = jnp.arange(U1)[None, :]
    t_idx = n_idx - u_idx                            # [N, U1]
    valid = (t_idx >= 0) & (t_idx < T)
    t_clip = jnp.clip(t_idx, 0, T - 1)
    gidx = jnp.broadcast_to(t_clip[None], (B, N, U1))
    lpb_diag = jnp.where(valid[None], jnp.take_along_axis(lp_blank, gidx, axis=1), NEG)
    lpl_diag = jnp.where(valid[None], jnp.take_along_axis(lp_label_p, gidx, axis=1), NEG)

    diag0 = jnp.full((B, U1), NEG, jnp.float32).at[:, 0].set(0.0)

    def step(prev, xs):
        lpb_d, lpl_d = xs                            # [B, U1] for diagonal n-1
        blank_term = prev + lpb_d
        lab = prev + lpl_d
        lab = jnp.concatenate([jnp.full((B, 1), NEG, jnp.float32), lab[:, :-1]], axis=1)
        new = jnp.logaddexp(blank_term, lab)
        return new, new

    xs = (jnp.moveaxis(lpb_diag[:, :N - 1], 1, 0),
          jnp.moveaxis(lpl_diag[:, :N - 1], 1, 0))
    _, ys = lax.scan(step, diag0, xs)
    all_diags = jnp.concatenate([diag0[None], ys], axis=0)          # [N, B, U1]

    bidx = jnp.arange(B)
    n_fin = (t_lens - 1) + u_lens
    alpha_fin = all_diags[n_fin, bidx, u_lens]
    ll = alpha_fin + lp_blank[bidx, t_lens - 1, u_lens]
    return -jnp.mean(ll)


def ctc_loss(logp, labels, t_lens, u_lens, blank):
    """Per-utterance CTC NLL via lax.scan. logp: [B,T,V] already log-softmaxed.
    (Caller sums over the batch, mirroring the reference `self.ctc(...).sum()`.)"""
    B, T, _ = logp.shape
    U = labels.shape[1]
    S = 2 * U + 1
    ext = jnp.full((B, S), blank, labels.dtype).at[:, 1::2].set(labels)
    lp_ext = jnp.take_along_axis(logp, ext[:, None, :], axis=2)      # [B,T,S]
    skip_ok = jnp.concatenate(
        [jnp.zeros((B, 2), bool),
         (ext[:, 2:] != blank) & (ext[:, 2:] != ext[:, :-2])], axis=1)

    alpha0 = (jnp.full((B, S), NEG, jnp.float32)
              .at[:, 0].set(lp_ext[:, 0, 0])
              .at[:, 1].set(lp_ext[:, 0, 1]))

    def step(prev, lp_t):
        s1 = jnp.concatenate([jnp.full((B, 1), NEG, jnp.float32), prev[:, :-1]], axis=1)
        s2 = jnp.concatenate([jnp.full((B, 2), NEG, jnp.float32), prev[:, :-2]], axis=1)
        comb = jnp.logaddexp(prev, s1)
        comb = jnp.where(skip_ok, jnp.logaddexp(comb, s2), comb)
        new = comb + lp_t
        return new, new

    _, ys = lax.scan(step, alpha0, jnp.moveaxis(lp_ext[:, 1:], 1, 0))
    A = jnp.concatenate([alpha0[None], ys], axis=0)                  # [T,B,S]

    bidx = jnp.arange(B)
    a_fin = A[t_lens - 1, bidx]                                      # [B,S]
    i1 = 2 * u_lens
    i2 = jnp.maximum(2 * u_lens - 1, 0)                              # guard u_len == 0
    ll = jnp.logaddexp(a_fin[bidx, i1],
                       jnp.where(u_lens > 0, a_fin[bidx, i2], NEG))
    return -ll


# ----------------------------------------------------------------------------
# Transducer forward (mirrors Transducer.forward)
# ----------------------------------------------------------------------------
def transducer_forward(params, padded_feats, feats_length, padded_labels,
                       label_lengths, blank=0, ignore_id=-1,
                       ctc_weight=0.0, transducer_weight=1.0):
    B, T, F = padded_feats.shape
    H = params["enc_w"].shape[1]

    # ---- encoder: linear + relu (Pallas), mask from lengths ----
    enc_out = pallas_linear(padded_feats.reshape(B * T, F),
                            params["enc_w"], params["enc_b"],
                            activation="relu").reshape(B, T, H)
    encoder_mask = jnp.arange(T)[None, :] < feats_length[:, None]      # [B,T]
    encoder_out_lens = encoder_mask.sum(axis=1).astype(jnp.int32)

    # ---- predictor: add_blank -> embedding gather (XLA) -> linear+tanh (Pallas)
    labels_noign = jnp.where(padded_labels == ignore_id, blank, padded_labels)
    labels_pad = jnp.concatenate(
        [jnp.full((B, 1), blank, padded_labels.dtype), labels_noign], axis=1)
    U1 = labels_pad.shape[1]
    emb = jnp.take(params["emb"], labels_pad, axis=0)                  # [B,U1,H]
    pred_out = pallas_linear(emb.reshape(B * U1, H),
                             params["pred_w"], params["pred_b"],
                             activation="tanh").reshape(B, U1, H)

    # ---- joint: enc/pred projections (Pallas) + fused joint kernel ----
    J = params["joint_enc_w"].shape[1]
    enc_proj = pallas_linear(enc_out.reshape(B * T, H),
                             params["joint_enc_w"], params["joint_enc_b"]
                             ).reshape(B, T, J)
    pred_proj = pallas_linear(pred_out.reshape(B * U1, H),
                              params["joint_pred_w"], params["joint_pred_b"]
                              ).reshape(B, U1, J)

    rnnt_text = labels_noign.astype(jnp.int32)                         # [B,U]
    lp_blank, lp_label = pallas_joint_logprobs(
        enc_proj, pred_proj, params["joint_out_w"], params["joint_out_b"],
        rnnt_text, blank)
    loss_rnnt = rnnt_loss(lp_blank, lp_label, encoder_out_lens,
                          label_lengths.astype(jnp.int32))

    # ---- ctc: vocab projection + fused log_softmax (Pallas) + CTC scan ----
    ctc_logp = pallas_linear(enc_out.reshape(B * T, H),
                             params["ctc_w"], params["ctc_b"],
                             log_softmax=True).reshape(B, T, -1)
    loss_ctc = ctc_loss(ctc_logp, rnnt_text, encoder_out_lens,
                        label_lengths.astype(jnp.int32), blank).sum()

    loss = ctc_weight * loss_ctc + transducer_weight * loss_rnnt
    return {"loss": loss, "loss_ctc": loss_ctc, "loss_rnnt": loss_rnnt,
            "encoder_out": enc_out, "encoder_out_lens": encoder_out_lens}

# TODO(synk): streaming greedy-search / forward_chunk decoding paths (host-side
# data-dependent while loops over hypotheses) are not translated to Pallas.


# ----------------------------------------------------------------------------
# Deterministic parameter init + example run
# ----------------------------------------------------------------------------
def init_params(key, feat_dim, hidden, joint_dim, vocab):
    ks = jax.random.split(key, 12)

    def w(k, shape, scale=0.1):
        return scale * jax.random.normal(k, shape, jnp.float32)

    return {
        "enc_w": w(ks[0], (feat_dim, hidden)), "enc_b": w(ks[1], (hidden,)),
        "emb": w(ks[2], (vocab, hidden)),
        "pred_w": w(ks[3], (hidden, hidden)), "pred_b": w(ks[4], (hidden,)),
        "joint_enc_w": w(ks[5], (hidden, joint_dim)), "joint_enc_b": w(ks[6], (joint_dim,)),
        "joint_pred_w": w(ks[7], (hidden, joint_dim)), "joint_pred_b": w(ks[8], (joint_dim,)),
        "joint_out_w": w(ks[9], (joint_dim, vocab)), "joint_out_b": w(ks[10], (vocab,)),
        "ctc_w": w(ks[11], (hidden, vocab)), "ctc_b": jnp.zeros((vocab,), jnp.float32),
    }


if __name__ == "__main__":
    B, T, F, H, J, U, V = 2, 8, 32, 32, 32, 4, 16
    blank, ignore_id = 0, -1

    key = jax.random.PRNGKey(0)
    kparam, kfeat, kchk = jax.random.split(key, 3)
    params = init_params(kparam, F, H, J, V)

    padded_feats = jax.random.normal(kfeat, (B, T, F), jnp.float32)
    feats_length = jnp.array([T, T - 2], jnp.int32)
    padded_labels = jnp.array([[3, 5, 2, ignore_id],
                               [7, 1, ignore_id, ignore_id]], jnp.int32)
    label_lengths = jnp.array([3, 2], jnp.int32)

    fwd = jax.jit(transducer_forward)
    out = fwd(params, padded_feats, feats_length, padded_labels, label_lengths)
    jax.block_until_ready(out)

    assert out["encoder_out"].shape == (B, T, H)
    assert out["encoder_out_lens"].shape == (B,)
    assert jnp.isfinite(out["loss"]) and jnp.isfinite(out["loss_rnnt"]) and jnp.isfinite(out["loss_ctc"])

    # ---- light spot-checks of the Pallas kernels vs pure-JAX references ----
    hi = jax.lax.Precision.HIGHEST
    k1, k2, k3 = jax.random.split(kchk, 3)

    x = jax.random.normal(k1, (B * T, F), jnp.float32)
    y = pallas_linear(x, params["enc_w"], params["enc_b"], activation="relu")
    y_ref = jnp.maximum(jnp.dot(x, params["enc_w"], precision=hi) + params["enc_b"], 0.0)
    assert float(jnp.max(jnp.abs(y - y_ref))) < 1e-3

    ep = jax.random.normal(k2, (B, T, J), jnp.float32)
    pp = jax.random.normal(k3, (B, U + 1, J), jnp.float32)
    tg = jnp.where(padded_labels == ignore_id, blank, padded_labels).astype(jnp.int32)
    lpb, lpl = pallas_joint_logprobs(ep, pp, params["joint_out_w"],
                                     params["joint_out_b"], tg, blank)
    h_ref = jnp.tanh(ep[:, :, None, :] + pp[:, None, :, :])
    logits_ref = jnp.einsum("btuj,jv->btuv", h_ref, params["joint_out_w"],
                            precision=hi) + params["joint_out_b"]
    logp_ref = jax.nn.log_softmax(logits_ref, axis=-1)
    lpb_ref = logp_ref[..., blank]
    lpl_ref = jnp.take_along_axis(logp_ref[:, :, :U, :],
                                  tg[:, None, :, None], axis=-1)[..., 0]
    assert float(jnp.max(jnp.abs(lpb - lpb_ref))) < 1e-3
    assert float(jnp.max(jnp.abs(lpl - lpl_ref))) < 1e-3

    print("KERNEL_OK")
</pallas_src>

<mosaic_0001>
module attributes {stable_mosaic.version = 11 : i64} {
  func.func @_linear_kernel(%arg0: i32, %arg1: memref<16x32xf32, #tpu.memory_space<vmem>>, %arg2: memref<32x32xf32, #tpu.memory_space<vmem>>, %arg3: memref<1x32xf32, #tpu.memory_space<vmem>>, %arg4: memref<16x32xf32, #tpu.memory_space<vmem>>) attributes {dimension_semantics = [#tpu.dimension_semantics<parallel>], iteration_bounds = array<i64: 1>, scalar_prefetch = 0 : i64, scratch_operands = 0 : i64, tpu.core_type = #tpu.core_type<tc>, window_params = [{transform_indices = @transform_0, window_bounds = array<i64: 16, 32>}, {pipeline_mode = #tpu.pipeline_mode<synchronous>, transform_indices = @transform_1, window_bounds = array<i64: 32, 32>}, {pipeline_mode = #tpu.pipeline_mode<synchronous>, transform_indices = @transform_2, window_bounds = array<i64: 1, 32>}, {transform_indices = @transform_3, window_bounds = array<i64: 16, 32>}]} {
    %c0 = arith.constant 0 : index
    %c0_0 = arith.constant 0 : index
    %0 = vector.load %arg1[%c0, %c0_0] : memref<16x32xf32, #tpu.memory_space<vmem>>, vector<16x32xf32>
    %c0_1 = arith.constant 0 : index
    %c0_2 = arith.constant 0 : index
    %1 = vector.load %arg2[%c0_1, %c0_2] : memref<32x32xf32, #tpu.memory_space<vmem>>, vector<32x32xf32>
    %cst = arith.constant dense<0.000000e+00> : vector<16x32xf32>
    %2 = tpu.matmul %0, %1, %cst {dimension_numbers = #tpu.dot_dimension_numbers<[1], [0], [0], [1], [0, 0, 1, 1], [], []>} : vector<16x32xf32>, vector<32x32xf32>, vector<16x32xf32> -> vector<16x32xf32>
    %c0_3 = arith.constant 0 : index
    %c0_4 = arith.constant 0 : index
    %3 = vector.load %arg3[%c0_3, %c0_4] : memref<1x32xf32, #tpu.memory_space<vmem>>, vector<1x32xf32>
    %4 = vector.broadcast %3 : vector<1x32xf32> to vector<16x32xf32>
    %5 = arith.addf %2, %4 : vector<16x32xf32>
    %cst_5 = arith.constant 0.000000e+00 : f32
    %6 = vector.broadcast %cst_5 : f32 to vector<16x32xf32>
    %7 = arith.maximumf %5, %6 : vector<16x32xf32>
    %c0_6 = arith.constant 0 : index
    %c0_7 = arith.constant 0 : index
    %8 = vector.load %arg4[%c0_6, %c0_7] : memref<16x32xf32, #tpu.memory_space<vmem>>, vector<16x32xf32>
    tpu.vector_store %arg4[%c0_6, %c0_7], %7 {strides = array<i32>} : memref<16x32xf32, #tpu.memory_space<vmem>>, vector<16x32xf32>,
    return
  }
  func.func @transform_0(%arg0: i32) -> (i32, i32) {
    %c0_i32 = arith.constant 0 : i32
    %c0_i32_0 = arith.constant 0 : i32
    return %arg0, %c0_i32 : i32, i32
  }
  func.func @transform_1(%arg0: i32) -> (i32, i32) {
    %c0_i32 = arith.constant 0 : i32
    %c0_i32_0 = arith.constant 0 : i32
    %c0_i32_1 = arith.constant 0 : i32
    return %c0_i32, %c0_i32_0 : i32, i32
  }
  func.func @transform_2(%arg0: i32) -> (i32, i32) {
    %c0_i32 = arith.constant 0 : i32
    %c0_i32_0 = arith.constant 0 : i32
    %c0_i32_1 = arith.constant 0 : i32
    return %c0_i32, %c0_i32_0 : i32, i32
  }
  func.func @transform_3(%arg0: i32) -> (i32, i32) {
    %c0_i32 = arith.constant 0 : i32
    %c0_i32_0 = arith.constant 0 : i32
    return %arg0, %c0_i32 : i32, i32
  }
}

module attributes {stable_mosaic.version = 11 : i64} {
  func.func @_linear_kernel(%arg0: i32, %arg1: memref<16x32xf32, #tpu.memory_space<vmem>>, %arg2: memref<32x16xf32, #tpu.memory_space<vmem>>, %arg3: memref<1x16xf32, #tpu.memory_space<vmem>>, %arg4: memref<16x16xf32, #tpu.memory_space<vmem>>) attributes {dimension_semantics = [#tpu.dimension_semantics<parallel>], iteration_bounds = array<i64: 1>, scalar_prefetch = 0 : i64, scratch_operands = 0 : i64, tpu.core_type = #tpu.core_type<tc>, window_params = [{transform_indices = @transform_0, window_bounds = array<i64: 16, 32>}, {pipeline_mode = #tpu.pipeline_mode<synchronous>, transform_indices = @transform_1, window_bounds = array<i64: 32, 16>}, {pipeline_mode = #tpu.pipeline_mode<synchronous>, transform_indices = @transform_2, window_bounds = array<i64: 1, 16>}, {transform_indices = @transform_3, window_bounds = array<i64: 16, 16>}]} {
    %c0 = arith.constant 0 : index
    %c0_0 = arith.constant 0 : index
    %0 = vector.load %arg1[%c0, %c0_0] : memref<16x32xf32, #tpu.memory_space<vmem>>, vector<16x32xf32>
    %c0_1 = arith.constant 0 : index
    %c0_2 = arith.constant 0 : index
    %1 = vector.load %arg2[%c0_1, %c0_2] : memref<32x16xf32, #tpu.memory_space<vmem>>, vector<32x16xf32>
    %cst = arith.constant dense<0.000000e+00> : vector<16x16xf32>
    %2 = tpu.matmul %0, %1, %cst {dimension_numbers = #tpu.dot_dimension_numbers<[1], [0], [0], [1], [0, 0, 1, 1], [], []>} : vector<16x32xf32>, vector<32x16xf32>, vector<16x16xf32> -> vector<16x16xf32>
    %c0_3 = arith.constant 0 : index
    %c0_4 = arith.constant 0 : index
    %3 = vector.load %arg3[%c0_3, %c0_4] : memref<1x16xf32, #tpu.memory_space<vmem>>, vector<1x16xf32>
    %4 = vector.broadcast %3 : vector<1x16xf32> to vector<16x16xf32>
    %5 = arith.addf %2, %4 : vector<16x16xf32>
    %cst_5 = arith.constant dense<0xFF800000> : vector<16xf32>
    %6 = vector.multi_reduction <maximumf>, %5, %cst_5 [1] : vector<16x16xf32> to vector<16xf32>
    %7 = vector.shape_cast %6 : vector<16xf32> to vector<16x1xf32>
    %8 = vector.broadcast %7 : vector<16x1xf32> to vector<16x16xf32>
    %9 = arith.subf %5, %8 : vector<16x16xf32>
    %10 = math.exp %9 : vector<16x16xf32>
    %cst_6 = arith.constant dense<0.000000e+00> : vector<16xf32>
    %11 = vector.multi_reduction <add>, %10, %cst_6 [1] : vector<16x16xf32> to vector<16xf32>
    %12 = vector.shape_cast %11 : vector<16xf32> to vector<16x1xf32>
    %13 = math.log %12 : vector<16x1xf32>
    %14 = arith.addf %7, %13 : vector<16x1xf32>
    %15 = vector.broadcast %14 : vector<16x1xf32> to vector<16x16xf32>
    %16 = arith.subf %5, %15 : vector<16x16xf32>
    %c0_7 = arith.constant 0 : index
    %c0_8 = arith.constant 0 : index
    %17 = vector.load %arg4[%c0_7, %c0_8] : memref<16x16xf32, #tpu.memory_space<vmem>>, vector<16x16xf32>
    tpu.vector_store %arg4[%c0_7, %c0_8], %16 {strides = array<i32>} : memref<16x16xf32, #tpu.memory_space<vmem>>, vector<16x16xf32>,
    return
  }
  func.func @transform_0(%arg0: i32) -> (i32, i32) {
    %c0_i32 = arith.constant 0 : i32
    %c0_i32_0 = arith.constant 0 : i32
    return %arg0, %c0_i32 : i32, i32
  }
  func.func @transform_1(%arg0: i32) -> (i32, i32) {
    %c0_i32 = arith.constant 0 : i32
    %c0_i32_0 = arith.constant 0 : i32
    %c0_i32_1 = arith.constant 0 : i32
    return %c0_i32, %c0_i32_0 : i32, i32
  }
  func.func @transform_2(%arg0: i32) -> (i32, i32) {
    %c0_i32 = arith.constant 0 : i32
    %c0_i32_0 = arith.constant 0 : i32
    %c0_i32_1 = arith.constant 0 : i32
    return %c0_i32, %c0_i32_0 : i32, i32
  }
  func.func @transform_3(%arg0: i32) -> (i32, i32) {
    %c0_i32 = arith.constant 0 : i32
    %c0_i32_0 = arith.constant 0 : i32
    return %arg0, %c0_i32 : i32, i32
  }
}

module attributes {stable_mosaic.version = 11 : i64} {
  func.func @_joint_kernel(%arg0: i32, %arg1: i32, %arg2: memref<2x5xi32, #tpu.memory_space<smem>>, %arg3: memref<1x8x32xf32, #tpu.memory_space<vmem>>, %arg4: memref<1x5x32xf32, #tpu.memory_space<vmem>>, %arg5: memref<32x16xf32, #tpu.memory_space<vmem>>, %arg6: memref<1x16xf32, #tpu.memory_space<vmem>>, %arg7: memref<1x1x40x1xf32, #tpu.memory_space<vmem>>, %arg8: memref<1x1x40x1xf32, #tpu.memory_space<vmem>>, %arg9: memref<40x32xf32, #tpu.memory_space<vmem>>, %arg10: memref<40x1xi32, #tpu.memory_space<vmem>>) attributes {dimension_semantics = [#tpu.dimension_semantics<parallel>, #tpu.dimension_semantics<parallel>], iteration_bounds = array<i64: 2, 1>, scalar_prefetch = 1 : i64, scratch_operands = 2 : i64, tpu.core_type = #tpu.core_type<tc>, window_params = [{transform_indices = @transform_0, window_bounds = array<i64: 1, 8, 32>}, {transform_indices = @transform_1, window_bounds = array<i64: 1, 5, 32>}, {pipeline_mode = #tpu.pipeline_mode<synchronous>, transform_indices = @transform_2, window_bounds = array<i64: 32, 16>}, {pipeline_mode = #tpu.pipeline_mode<synchronous>, transform_indices = @transform_3, window_bounds = array<i64: 1, 16>}, {transform_indices = @transform_4, window_bounds = array<i64: 1, 1, 40, 1>}, {transform_indices = @transform_5, window_bounds = array<i64: 1, 1, 40, 1>}]} {
    %c0 = arith.constant 0 : index
    %c0_0 = arith.constant 0 : index
    %c0_1 = arith.constant 0 : index
    %0 = vector.load %arg3[%c0, %c0_0, %c0_1] : memref<1x8x32xf32, #tpu.memory_space<vmem>>, vector<1x8x32xf32>
    %1 = vector.shape_cast %0 : vector<1x8x32xf32> to vector<8x32xf32>
    %c0_2 = arith.constant 0 : index
    %c0_3 = arith.constant 0 : index
    %c0_4 = arith.constant 0 : index
    %2 = vector.load %arg4[%c0_2, %c0_3, %c0_4] : memref<1x5x32xf32, #tpu.memory_space<vmem>>, vector<1x5x32xf32>
    %3 = vector.shape_cast %2 : vector<1x5x32xf32> to vector<5x32xf32>
    %4 = vector.extract_strided_slice %3 {offsets = [0, 0], sizes = [1, 32], strides = [1, 1]} : vector<5x32xf32> to vector<1x32xf32>
    %5 = vector.broadcast %4 : vector<1x32xf32> to vector<8x32xf32>
    %6 = arith.addf %1, %5 : vector<8x32xf32>
    %7 = math.tanh %6 : vector<8x32xf32>
    %c0_5 = arith.constant 0 : index
    %c0_6 = arith.constant 0 : index
    %8 = vector.load %arg9[%c0_5, %c0_6] : memref<40x32xf32, #tpu.memory_space<vmem>>, vector<8x32xf32>
    tpu.vector_store %arg9[%c0_5, %c0_6], %7 {strides = array<i32>} : memref<40x32xf32, #tpu.memory_space<vmem>>, vector<8x32xf32>,
    %9 = arith.index_cast %arg0 : i32 to index
    %c0_7 = arith.constant 0 : index
    %10 = memref.load %arg2[%9, %c0_7] : memref<2x5xi32, #tpu.memory_space<smem>>
    %11 = vector.broadcast %10 : i32 to vector<8x1xi32>
    %c0_8 = arith.constant 0 : index
    %c0_9 = arith.constant 0 : index
    %12 = vector.load %arg10[%c0_8, %c0_9] : memref<40x1xi32, #tpu.memory_space<vmem>>, vector<8x1xi32>
    tpu.vector_store %arg10[%c0_8, %c0_9], %11 {strides = array<i32>} : memref<40x1xi32, #tpu.memory_space<vmem>>, vector<8x1xi32>,
    %13 = vector.extract_strided_slice %3 {offsets = [1, 0], sizes = [1, 32], strides = [1, 1]} : vector<5x32xf32> to vector<1x32xf32>
    %14 = vector.broadcast %13 : vector<1x32xf32> to vector<8x32xf32>
    %15 = arith.addf %1, %14 : vector<8x32xf32>
    %16 = math.tanh %15 : vector<8x32xf32>
    %c8 = arith.constant 8 : index
    %c0_10 = arith.constant 0 : index
    %17 = vector.load %arg9[%c8, %c0_10] : memref<40x32xf32, #tpu.memory_space<vmem>>, vector<8x32xf32>
    tpu.vector_store %arg9[%c8, %c0_10], %16 {strides = array<i32>} : memref<40x32xf32, #tpu.memory_space<vmem>>, vector<8x32xf32>,
    %18 = arith.index_cast %arg0 : i32 to index
    %c1 = arith.constant 1 : index
    %19 = memref.load %arg2[%18, %c1] : memref<2x5xi32, #tpu.memory_space<smem>>
    %20 = vector.broadcast %19 : i32 to vector<8x1xi32>
    %c8_11 = arith.constant 8 : index
    %c0_12 = arith.constant 0 : index
    %21 = vector.load %arg10[%c8_11, %c0_12] : memref<40x1xi32, #tpu.memory_space<vmem>>, vector<8x1xi32>
    tpu.vector_store %arg10[%c8_11, %c0_12], %20 {strides = array<i32>} : memref<40x1xi32, #tpu.memory_space<vmem>>, vector<8x1xi32>,
    %22 = vector.extract_strided_slice %3 {offsets = [2, 0], sizes = [1, 32], strides = [1, 1]} : vector<5x32xf32> to vector<1x32xf32>
    %23 = vector.broadcast %22 : vector<1x32xf32> to vector<8x32xf32>
    %24 = arith.addf %1, %23 : vector<8x32xf32>
    %25 = math.tanh %24 : vector<8x32xf32>
    %c16 = arith.constant 16 : index
    %c0_13 = arith.constant 0 : index
    %26 = vector.load %arg9[%c16, %c0_13] : memref<40x32xf32, #tpu.memory_space<vmem>>, vector<8x32xf32>
    tpu.vector_store %arg9[%c16, %c0_13], %25 {strides = array<i32>} : memref<40x32xf32, #tpu.memory_space<vmem>>, vector<8x32xf32>,
    %27 = arith.index_cast %arg0 : i32 to index
    %c2 = arith.constant 2 : index
    %28 = memref.load %arg2[%27, %c2] : memref<2x5xi32, #tpu.memory_space<smem>>
    %29 = vector.broadcast %28 : i32 to vector<8x1xi32>
    %c16_14 = arith.constant 16 : index
    %c0_15 = arith.constant 0 : index
    %30 = vector.load %arg10[%c16_14, %c0_15] : memref<40x1xi32, #tpu.memory_space<vmem>>, vector<8x1xi32>
    tpu.vector_store %arg10[%c16_14, %c0_15], %29 {strides = array<i32>} : memref<40x1xi32, #tpu.memory_space<vmem>>, vector<8x1xi32>,
    %31 = vector.extract_strided_slice %3 {offsets = [3, 0], sizes = [1, 32], strides = [1, 1]} : vector<5x32xf32> to vector<1x32xf32>
    %32 = vector.broadcast %31 : vector<1x32xf32> to vector<8x32xf32>
    %33 = arith.addf %1, %32 : vector<8x32xf32>
    %34 = math.tanh %33 : vector<8x32xf32>
    %c24 = arith.constant 24 : index
    %c0_16 = arith.constant 0 : index
    %35 = vector.load %arg9[%c24, %c0_16] : memref<40x32xf32, #tpu.memory_space<vmem>>, vector<8x32xf32>
    tpu.vector_store %arg9[%c24, %c0_16], %34 {strides = array<i32>} : memref<40x32xf32, #tpu.memory_space<vmem>>, vector<8x32xf32>,
    %36 = arith.index_cast %arg0 : i32 to index
    %c3 = arith.constant 3 : index
    %37 = memref.load %arg2[%36, %c3] : memref<2x5xi32, #tpu.memory_space<smem>>
    %38 = vector.broadcast %37 : i32 to vector<8x1xi32>
    %c24_17 = arith.constant 24 : index
    %c0_18 = arith.constant 0 : index
    %39 = vector.load %arg10[%c24_17, %c0_18] : memref<40x1xi32, #tpu.memory_space<vmem>>, vector<8x1xi32>
    tpu.vector_store %arg10[%c24_17, %c0_18], %38 {strides = array<i32>} : memref<40x1xi32, #tpu.memory_space<vmem>>, vector<8x1xi32>,
    %40 = vector.extract_strided_slice %3 {offsets = [4, 0], sizes = [1, 32], strides = [1, 1]} : vector<5x32xf32> to vector<1x32xf32>
    %41 = vector.broadcast %40 : vector<1x32xf32> to vector<8x32xf32>
    %42 = arith.addf %1, %41 : vector<8x32xf32>
    %43 = math.tanh %42 : vector<8x32xf32>
    %c32 = arith.constant 32 : index
    %c0_19 = arith.constant 0 : index
    %44 = vector.load %arg9[%c32, %c0_19] : memref<40x32xf32, #tpu.memory_space<vmem>>, vector<8x32xf32>
    tpu.vector_store %arg9[%c32, %c0_19], %43 {strides = array<i32>} : memref<40x32xf32, #tpu.memory_space<vmem>>, vector<8x32xf32>,
    %45 = arith.index_cast %arg0 : i32 to index
    %c4 = arith.constant 4 : index
    %46 = memref.load %arg2[%45, %c4] : memref<2x5xi32, #tpu.memory_space<smem>>
    %47 = vector.broadcast %46 : i32 to vector<8x1xi32>
    %c32_20 = arith.constant 32 : index
    %c0_21 = arith.constant 0 : index
    %48 = vector.load %arg10[%c32_20, %c0_21] : memref<40x1xi32, #tpu.memory_space<vmem>>, vector<8x1xi32>
    tpu.vector_store %arg10[%c32_20, %c0_21], %47 {strides = array<i32>} : memref<40x1xi32, #tpu.memory_space<vmem>>, vector<8x1xi32>,
    %c0_22 = arith.constant 0 : index
    %c0_23 = arith.constant 0 : index
    %49 = vector.load %arg9[%c0_22, %c0_23] : memref<40x32xf32, #tpu.memory_space<vmem>>, vector<40x32xf32>
    %c0_24 = arith.constant 0 : index
    %c0_25 = arith.constant 0 : index
    %50 = vector.load %arg5[%c0_24, %c0_25] : memref<32x16xf32, #tpu.memory_space<vmem>>, vector<32x16xf32>
    %cst = arith.constant dense<0.000000e+00> : vector<40x16xf32>
    %51 = tpu.matmul %49, %50, %cst {dimension_numbers = #tpu.dot_dimension_numbers<[1], [0], [0], [1], [0, 0, 1, 1], [], []>} : vector<40x32xf32>, vector<32x16xf32>, vector<40x16xf32> -> vector<40x16xf32>
    %c0_26 = arith.constant 0 : index
    %c0_27 = arith.constant 0 : index
    %52 = vector.load %arg6[%c0_26, %c0_27] : memref<1x16xf32, #tpu.memory_space<vmem>>, vector<1x16xf32>
    %53 = vector.broadcast %52 : vector<1x16xf32> to vector<40x16xf32>
    %54 = arith.addf %51, %53 : vector<40x16xf32>
    %cst_28 = arith.constant dense<0xFF800000> : vector<40xf32>
    %55 = vector.multi_reduction <maximumf>, %54, %cst_28 [1] : vector<40x16xf32> to vector<40xf32>
    %56 = vector.shape_cast %55 : vector<40xf32> to vector<40x1xf32>
    %57 = vector.broadcast %56 : vector<40x1xf32> to vector<40x16xf32>
    %58 = arith.subf %54, %57 : vector<40x16xf32>
    %59 = math.exp %58 : vector<40x16xf32>
    %cst_29 = arith.constant dense<0.000000e+00> : vector<40xf32>
    %60 = vector.multi_reduction <add>, %59, %cst_29 [1] : vector<40x16xf32> to vector<40xf32>
    %61 = vector.shape_cast %60 : vector<40xf32> to vector<40x1xf32>
    %62 = math.log %61 : vector<40x1xf32>
    %63 = arith.addf %56, %62 : vector<40x1xf32>
    %64 = vector.broadcast %63 : vector<40x1xf32> to vector<40x16xf32>
    %65 = arith.subf %54, %64 : vector<40x16xf32>
    %66 = vector.extract_strided_slice %65 {offsets = [0, 0], sizes = [40, 1], strides = [1, 1]} : vector<40x16xf32> to vector<40x1xf32>
    %c0_30 = arith.constant 0 : index
    %c0_31 = arith.constant 0 : index
    %c0_32 = arith.constant 0 : index
    %c0_33 = arith.constant 0 : index
    %67 = vector.load %arg7[%c0_30, %c0_31, %c0_32, %c0_33] : memref<1x1x40x1xf32, #tpu.memory_space<vmem>>, vector<1x1x40x1xf32>
    %68 = vector.shape_cast %67 : vector<1x1x40x1xf32> to vector<40x1xf32>
    %69 = vector.shape_cast %66 : vector<40x1xf32> to vector<1x1x40x1xf32>
    tpu.vector_store %arg7[%c0_30, %c0_31, %c0_32, %c0_33], %69 {strides = array<i32>} : memref<1x1x40x1xf32, #tpu.memory_space<vmem>>, vector<1x1x40x1xf32>,
    %70 = tpu.iota {dimensions = array<i32: 1>} : vector<40x16xi32>
    %c0_34 = arith.constant 0 : index
    %c0_35 = arith.constant 0 : index
    %71 = vector.load %arg10[%c0_34, %c0_35] : memref<40x1xi32, #tpu.memory_space<vmem>>, vector<40x1xi32>
    %72 = vector.broadcast %71 : vector<40x1xi32> to vector<40x16xi32>
    %73 = arith.cmpi eq, %70, %72 : vector<40x16xi32>
    %cst_36 = arith.constant 0.000000e+00 : f32
    %74 = vector.broadcast %cst_36 : f32 to vector<40x16xf32>
    %75 = arith.select %73, %65, %74 : vector<40x16xi1>, vector<40x16xf32>
    %cst_37 = arith.constant dense<0.000000e+00> : vector<40xf32>
    %76 = vector.multi_reduction <add>, %75, %cst_37 [1] : vector<40x16xf32> to vector<40xf32>
    %77 = vector.shape_cast %76 : vector<40xf32> to vector<40x1xf32>
    %c0_38 = arith.constant 0 : index
    %c0_39 = arith.constant 0 : index
    %c0_40 = arith.constant 0 : index
    %c0_41 = arith.constant 0 : index
    %78 = vector.load %arg8[%c0_38, %c0_39, %c0_40, %c0_41] : memref<1x1x40x1xf32, #tpu.memory_space<vmem>>, vector<1x1x40x1xf32>
    %79 = vector.shape_cast %78 : vector<1x1x40x1xf32> to vector<40x1xf32>
    %80 = vector.shape_cast %77 : vector<40x1xf32> to vector<1x1x40x1xf32>
    tpu.vector_store %arg8[%c0_38, %c0_39, %c0_40, %c0_41], %80 {strides = array<i32>} : memref<1x1x40x1xf32, #tpu.memory_space<vmem>>, vector<1x1x40x1xf32>,
    return
  }
  func.func @transform_0(%arg0: i32, %arg1: i32, %arg2: memref<2x5xi32, #tpu.memory_space<smem>>) -> (i32, i32, i32) {
    %c0_i32 = arith.constant 0 : i32
    %c0_i32_0 = arith.constant 0 : i32
    return %arg0, %arg1, %c0_i32 : i32, i32, i32
  }
  func.func @transform_1(%arg0: i32, %arg1: i32, %arg2: memref<2x5xi32, #tpu.memory_space<smem>>) -> (i32, i32, i32) {
    %c0_i32 = arith.constant 0 : i32
    %c0_i32_0 = arith.constant 0 : i32
    %c0_i32_1 = arith.constant 0 : i32
    return %arg0, %c0_i32, %c0_i32_0 : i32, i32, i32
  }
  func.func @transform_2(%arg0: i32, %arg1: i32, %arg2: memref<2x5xi32, #tpu.memory_space<smem>>) -> (i32, i32) {
    %c0_i32 = arith.constant 0 : i32
    %c0_i32_0 = arith.constant 0 : i32
    %c0_i32_1 = arith.constant 0 : i32
    return %c0_i32, %c0_i32_0 : i32, i32
  }
  func.func @transform_3(%arg0: i32, %arg1: i32, %arg2: memref<2x5xi32, #tpu.memory_space<smem>>) -> (i32, i32) {
    %c0_i32 = arith.constant 0 : i32
    %c0_i32_0 = arith.constant 0 : i32
    %c0_i32_1 = arith.constant 0 : i32
    return %c0_i32, %c0_i32_0 : i32, i32
  }
  func.func @transform_4(%arg0: i32, %arg1: i32, %arg2: memref<2x5xi32, #tpu.memory_space<smem>>) -> (i32, i32, i32, i32) {
    %c0_i32 = arith.constant 0 : i32
    %c0_i32_0 = arith.constant 0 : i32
    %c0_i32_1 = arith.constant 0 : i32
    return %arg0, %arg1, %c0_i32, %c0_i32_0 : i32, i32, i32, i32
  }
  func.func @transform_5(%arg0: i32, %arg1: i32, %arg2: memref<2x5xi32, #tpu.memory_space<smem>>) -> (i32, i32, i32, i32) {
    %c0_i32 = arith.constant 0 : i32
    %c0_i32_0 = arith.constant 0 : i32
    %c0_i32_1 = arith.constant 0 : i32
    return %arg0, %arg1, %c0_i32, %c0_i32_0 : i32, i32, i32, i32
  }
}

module attributes {stable_mosaic.version = 11 : i64} {
  func.func @_linear_kernel(%arg0: i32, %arg1: memref<16x32xf32, #tpu.memory_space<vmem>>, %arg2: memref<32x32xf32, #tpu.memory_space<vmem>>, %arg3: memref<1x32xf32, #tpu.memory_space<vmem>>, %arg4: memref<16x32xf32, #tpu.memory_space<vmem>>) attributes {dimension_semantics = [#tpu.dimension_semantics<parallel>], iteration_bounds = array<i64: 1>, scalar_prefetch = 0 : i64, scratch_operands = 0 : i64, tpu.core_type = #tpu.core_type<tc>, window_params = [{transform_indices = @transform_0, window_bounds = array<i64: 16, 32>}, {pipeline_mode = #tpu.pipeline_mode<synchronous>, transform_indices = @transform_1, window_bounds = array<i64: 32, 32>}, {pipeline_mode = #tpu.pipeline_mode<synchronous>, transform_indices = @transform_2, window_bounds = array<i64: 1, 32>}, {transform_indices = @transform_3, window_bounds = array<i64: 16, 32>}]} {
    %c0 = arith.constant 0 : index
    %c0_0 = arith.constant 0 : index
    %0 = vector.load %arg1[%c0, %c0_0] : memref<16x32xf32, #tpu.memory_space<vmem>>, vector<16x32xf32>
    %c0_1 = arith.constant 0 : index
    %c0_2 = arith.constant 0 : index
    %1 = vector.load %arg2[%c0_1, %c0_2] : memref<32x32xf32, #tpu.memory_space<vmem>>, vector<32x32xf32>
    %cst = arith.constant dense<0.000000e+00> : vector<16x32xf32>
    %2 = tpu.matmul %0, %1, %cst {dimension_numbers = #tpu.dot_dimension_numbers<[1], [0], [0], [1], [0, 0, 1, 1], [], []>} : vector<16x32xf32>, vector<32x32xf32>, vector<16x32xf32> -> vector<16x32xf32>
    %c0_3 = arith.constant 0 : index
    %c0_4 = arith.constant 0 : index
    %3 = vector.load %arg3[%c0_3, %c0_4] : memref<1x32xf32, #tpu.memory_space<vmem>>, vector<1x32xf32>
    %4 = vector.broadcast %3 : vector<1x32xf32> to vector<16x32xf32>
    %5 = arith.addf %2, %4 : vector<16x32xf32>
    %6 = math.tanh %5 : vector<16x32xf32>
    %c0_5 = arith.constant 0 : index
    %c0_6 = arith.constant 0 : index
    %7 = vector.load %arg4[%c0_5, %c0_6] : memref<16x32xf32, #tpu.memory_space<vmem>>, vector<16x32xf32>
    tpu.vector_store %arg4[%c0_5, %c0_6], %6 {strides = array<i32>} : memref<16x32xf32, #tpu.memory_space<vmem>>, vector<16x32xf32>,
    return
  }
  func.func @transform_0(%arg0: i32) -> (i32, i32) {
    %c0_i32 = arith.constant 0 : i32
    %c0_i32_0 = arith.constant 0 : i32
    return %arg0, %c0_i32 : i32, i32
  }
  func.func @transform_1(%arg0: i32) -> (i32, i32) {
    %c0_i32 = arith.constant 0 : i32
    %c0_i32_0 = arith.constant 0 : i32
    %c0_i32_1 = arith.constant 0 : i32
    return %c0_i32, %c0_i32_0 : i32, i32
  }
  func.func @transform_2(%arg0: i32) -> (i32, i32) {
    %c0_i32 = arith.constant 0 : i32
    %c0_i32_0 = arith.constant 0 : i32
    %c0_i32_1 = arith.constant 0 : i32
    return %c0_i32, %c0_i32_0 : i32, i32
  }
  func.func @transform_3(%arg0: i32) -> (i32, i32) {
    %c0_i32 = arith.constant 0 : i32
    %c0_i32_0 = arith.constant 0 : i32
    return %arg0, %c0_i32 : i32, i32
  }
}

module attributes {stable_mosaic.version = 11 : i64} {
  func.func @_linear_kernel(%arg0: i32, %arg1: memref<16x32xf32, #tpu.memory_space<vmem>>, %arg2: memref<32x32xf32, #tpu.memory_space<vmem>>, %arg3: memref<1x32xf32, #tpu.memory_space<vmem>>, %arg4: memref<16x32xf32, #tpu.memory_space<vmem>>) attributes {dimension_semantics = [#tpu.dimension_semantics<parallel>], iteration_bounds = array<i64: 1>, scalar_prefetch = 0 : i64, scratch_operands = 0 : i64, tpu.core_type = #tpu.core_type<tc>, window_params = [{transform_indices = @transform_0, window_bounds = array<i64: 16, 32>}, {pipeline_mode = #tpu.pipeline_mode<synchronous>, transform_indices = @transform_1, window_bounds = array<i64: 32, 32>}, {pipeline_mode = #tpu.pipeline_mode<synchronous>, transform_indices = @transform_2, window_bounds = array<i64: 1, 32>}, {transform_indices = @transform_3, window_bounds = array<i64: 16, 32>}]} {
    %c0 = arith.constant 0 : index
    %c0_0 = arith.constant 0 : index
    %0 = vector.load %arg1[%c0, %c0_0] : memref<16x32xf32, #tpu.memory_space<vmem>>, vector<16x32xf32>
    %c0_1 = arith.constant 0 : index
    %c0_2 = arith.constant 0 : index
    %1 = vector.load %arg2[%c0_1, %c0_2] : memref<32x32xf32, #tpu.memory_space<vmem>>, vector<32x32xf32>
    %cst = arith.constant dense<0.000000e+00> : vector<16x32xf32>
    %2 = tpu.matmul %0, %1, %cst {dimension_numbers = #tpu.dot_dimension_numbers<[1], [0], [0], [1], [0, 0, 1, 1], [], []>} : vector<16x32xf32>, vector<32x32xf32>, vector<16x32xf32> -> vector<16x32xf32>
    %c0_3 = arith.constant 0 : index
    %c0_4 = arith.constant 0 : index
    %3 = vector.load %arg3[%c0_3, %c0_4] : memref<1x32xf32, #tpu.memory_space<vmem>>, vector<1x32xf32>
    %4 = vector.broadcast %3 : vector<1x32xf32> to vector<16x32xf32>
    %5 = arith.addf %2, %4 : vector<16x32xf32>
    %c0_5 = arith.constant 0 : index
    %c0_6 = arith.constant 0 : index
    %6 = vector.load %arg4[%c0_5, %c0_6] : memref<16x32xf32, #tpu.memory_space<vmem>>, vector<16x32xf32>
    tpu.vector_store %arg4[%c0_5, %c0_6], %5 {strides = array<i32>} : memref<16x32xf32, #tpu.memory_space<vmem>>, vector<16x32xf32>,
    return
  }
  func.func @transform_0(%arg0: i32) -> (i32, i32) {
    %c0_i32 = arith.constant 0 : i32
    %c0_i32_0 = arith.constant 0 : i32
    return %arg0, %c0_i32 : i32, i32
  }
  func.func @transform_1(%arg0: i32) -> (i32, i32) {
    %c0_i32 = arith.constant 0 : i32
    %c0_i32_0 = arith.constant 0 : i32
    %c0_i32_1 = arith.constant 0 : i32
    return %c0_i32, %c0_i32_0 : i32, i32
  }
  func.func @transform_2(%arg0: i32) -> (i32, i32) {
    %c0_i32 = arith.constant 0 : i32
    %c0_i32_0 = arith.constant 0 : i32
    %c0_i32_1 = arith.constant 0 : i32
    return %c0_i32, %c0_i32_0 : i32, i32
  }
  func.func @transform_3(%arg0: i32) -> (i32, i32) {
    %c0_i32 = arith.constant 0 : i32
    %c0_i32_0 = arith.constant 0 : i32
    return %arg0, %c0_i32 : i32, i32
  }
}

</mosaic_0001>

<bundles_post_ra>
// kernel: custom-call.21
= control target key start
LH: loop header
LB: loop body
LE: loop exit
PB: predicated region body
PF: predicated region fallthrough
CT: control target
= control target key end

     0   :  { %s6_s0 = inlined_call_operand.vmem [shape: f32[7,2,9], index: 0, kind: output, shape index: {}]  }

// kernel: transducer_forward.11
= control target key start
LH: loop header
LB: loop body
LE: loop exit
PB: predicated region body
PF: predicated region fallthrough
CT: control target
= control target key end

     0   :  { %vm27_vm0 = vcmask 261120   ;;  %vm109_vm1 = vcmask 130048   ;;  %s225_s1 = inlined_call_operand.vmem [shape: f32[32,16], index: 1, kind: input, shape index: {}]   ;;  %s226_s0 = inlined_call_operand.vmem [shape: f32[16,32], index: 0, kind: input, shape index: {}]   ;;  %s227_s2 = inlined_call_operand.vmem [shape: f32[1,16], index: 2, kind: input, shape index: {}]   ;;  %s228_s3 = inlined_call_operand.vmem [shape: f32[16,16], index: 3, kind: output, shape index: {}]  }
   0x1   :  { %v19_v0 = vld [vmem:[%s225_s1 + $0x18] sm:$0xff]  ;;  %v18_v1 = vld [vmem:[%s225_s1 + $0x10] sm:$0xff]  ;;  %v14_v2 = vld [vmem:[%s226_s0] sm:$0xff] }
   0x2   :  { %151 = vmatprep.subr.mxu0 %v19_v0  ;;  %v17_v3 = vld [vmem:[%s225_s1 + $0x8] sm:$0xff]  ;;  %159 = vmatprep.mubr.msk.f32.mxu0 %vm27_vm0, %v14_v2  ;;  %v16_v4 = vld [vmem:[%s225_s1] sm:$0xff] }
   0x3   :  { %152 = vmatpush3.msra.mxu0 %v19_v0  ;;  %v15_v5 = vld [vmem:[%s226_s0 + $0x8] sm:$0xff]  ;;  %v142_v7 = vld [vmem:[%s227_s2] ss:$0 sm:$0xff] }
   0x4   :  { %153 = vmatprep.subr.mxu0 %v18_v1 }
   0x5   :  { %154 = vmatpush3.msra.mxu0 %v18_v1 }
   0x6   :  { %155 = vmatprep.subr.mxu0 %v17_v3 }
   0x7   :  { %156 = vmatpush3.msra.mxu0 %v17_v3 }
   0x8   :  { %157 = vmatprep.subr.mxu0 %v16_v4 }
   0x9   :  { %158 = vmatpush3.msra.mxu0 %v16_v4 }
   0xa   :  { %160 = vmatmul.mubr.msk.f32.vlgmr.msra.gmra.mxu0 %vm27_vm0, %v15_v5 }
  0xca   :  { %v161_v6 = vpop.f32.mrf.mxu0 }
  0xcb   :  { %v106_v10 = vadd.f32 %v161_v6, %v142_v7 }
  0xcc   :  { %v100_v8 = vpop.f32.mrf.mxu0 }
  0xcd   :  { %v101_v9 = vadd.f32 %v142_v7, %v100_v8  ;;  %v113_v12 = vsel %vm109_vm1, %v106_v10, -inf }
  0xcf   :  { %v110_v11 = vsel %vm109_vm1, %v101_v9, -inf }
  0xd0   :  { %111 = vmax.xlane.f32.xlu0 %v110_v11 }
  0xd4   :  { %114 = vmax.xlane.f32.xlu0 %v113_v12 }
 0x159   :  { %v112_v13 = vpop.xlane.xlu0 %111 }
 0x15a   :  { %v116_v14 = vsub.f32 %v101_v9, %v112_v13 }
 0x15c   :  { %v118_v15 = vmul.f32 1.442695, %v116_v14 }
 0x15d   :  { %v115_v16 = vpop.xlane.xlu0 %114 }
 0x15e   :  { %162 = vpow2.f32 %v118_v15  ;;  %v117_v17 = vsub.f32 %v106_v10, %v115_v16 }
 0x160   :  { %v120_v18 = vmul.f32 1.442695, %v117_v17 }
 0x162   :  { %164 = vpow2.f32 %v120_v18 }
 0x16b   :  { %v163_v19 = vpop.eup %162 }
 0x16c   :  { %v122_v20 = vsel %vm109_vm1, %v163_v19, 0.0 }
 0x16d   :  { %123 = vadd.xlane.f32.xlu1 %v122_v20 }
 0x16f   :  { %v165_v21 = vpop.eup %164 }
 0x170   :  { %v125_v22 = vsel %vm109_vm1, %v165_v21, 0.0 }
 0x171   :  { %126 = vadd.xlane.f32.xlu1 %v125_v22 }
 0x1f6   :  { %v124_v23 = vpop.xlane.xlu1 %123 }
 0x1f7   :  { %166 = vlog2.f32 %v124_v23 }
 0x1fa   :  { %v127_v24 = vpop.xlane.xlu1 %126 }
 0x1fb   :  { %168 = vlog2.f32 %v127_v24 }
 0x204   :  { %v167_v25 = vpop.eup %166 }
 0x205   :  { %v129_v26 = vmul.f32 0.6931472, %v167_v25 }
 0x207   :  { %v132_v27 = vadd.f32 %v129_v26, %v112_v13 }
 0x208   :  { %v169_v28 = vpop.eup %168 }
 0x209   :  { %v134_v29 = vsub.f32 %v101_v9, %v132_v27  ;;  %v131_v30 = vmul.f32 0.6931472, %v169_v28 }
 0x20b   :  { %136 = vst.msk [vmem:[%s228_s3] sm:$0xff] %vm109_vm1, %v134_v29  ;;  %v133_v31 = vadd.f32 %v131_v30, %v115_v16 }
 0x20d   :  { %v135_v32 = vsub.f32 %v106_v10, %v133_v31 }
 0x20f   :  { %137 = vst.msk [vmem:[%s228_s3 + $0x8] sm:$0xff] %vm109_vm1, %v135_v32 }

// kernel: transducer_forward.6
= control target key start
LH: loop header
LB: loop body
LE: loop exit
PB: predicated region body
PF: predicated region fallthrough
CT: control target
= control target key end

     0   :  { %vm27_vm0 = vcmask 261120   ;;  %s188_s1 = inlined_call_operand.vmem [shape: f32[32,32], index: 1, kind: input, shape index: {}]   ;;  %s189_s0 = inlined_call_operand.vmem [shape: f32[16,32], index: 0, kind: input, shape index: {}]   ;;  %s190_s2 = inlined_call_operand.vmem [shape: f32[1,32], index: 2, kind: input, shape index: {}]   ;;  %s191_s3 = inlined_call_operand.vmem [shape: f32[16,32], index: 3, kind: output, shape index: {}]  }
   0x1   :  { %v19_v0 = vld [vmem:[%s188_s1 + $0x18] sm:$0xff]  ;;  %v18_v1 = vld [vmem:[%s188_s1 + $0x10] sm:$0xff]  ;;  %v14_v2 = vld [vmem:[%s189_s0] sm:$0xff] }
   0x2   :  { %126 = vmatprep.subr.mxu0 %v19_v0  ;;  %v17_v3 = vld [vmem:[%s188_s1 + $0x8] sm:$0xff]  ;;  %134 = vmatprep.mubr.msk.f32.mxu0 %vm27_vm0, %v14_v2  ;;  %v16_v4 = vld [vmem:[%s188_s1] sm:$0xff] }
   0x3   :  { %127 = vmatpush3.msra.mxu0 %v19_v0  ;;  %v15_v5 = vld [vmem:[%s189_s0 + $0x8] sm:$0xff]  ;;  %v117_v6 = vld [vmem:[%s190_s2] ss:$0 sm:$0xff] }
   0x4   :  { %128 = vmatprep.subr.mxu0 %v18_v1 }
   0x5   :  { %129 = vmatpush3.msra.mxu0 %v18_v1 }
   0x6   :  { %130 = vmatprep.subr.mxu0 %v17_v3 }
   0x7   :  { %131 = vmatpush3.msra.mxu0 %v17_v3 }
   0x8   :  { %132 = vmatprep.subr.mxu0 %v16_v4 }
   0x9   :  { %133 = vmatpush3.msra.mxu0 %v16_v4 }
   0xa   :  { %135 = vmatmul.mubr.msk.f32.vlgmr.msra.gmra.mxu0 %vm27_vm0, %v15_v5 }
  0xca   :  { %v136_v7 = vpop.f32.mrf.mxu0 }
  0xcb   :  { %v106_v8 = vadd.f32 %v136_v7, %v117_v6 }
  0xcc   :  { %v100_v9 = vpop.f32.mrf.mxu0 }
  0xcd   :  { %v110_v10 = vmax.f32 %v106_v8, 0.0  ;;  %v101_v11 = vadd.f32 %v117_v6, %v100_v9 }
  0xcf   :  { %112 = vst.msk [vmem:[%s191_s3 + $0x8] sm:$0xff] %vm27_vm0, %v110_v10  ;;  %v109_v12 = vmax.f32 %v101_v11, 0.0 }
  0xd1   :  { %111 = vst.msk [vmem:[%s191_s3] sm:$0xff] %vm27_vm0, %v109_v12 }

// kernel: transducer_forward.9
= control target key start
LH: loop header
LB: loop body
LE: loop exit
PB: predicated region body
PF: predicated region fallthrough
CT: control target
= control target key end

     0   :  { %vm27_vm0 = vcmask 261120   ;;  %s186_s1 = inlined_call_operand.vmem [shape: f32[32,32], index: 1, kind: input, shape index: {}]   ;;  %s187_s0 = inlined_call_operand.vmem [shape: f32[16,32], index: 0, kind: input, shape index: {}]   ;;  %s188_s2 = inlined_call_operand.vmem [shape: f32[1,32], index: 2, kind: input, shape index: {}]   ;;  %s189_s3 = inlined_call_operand.vmem [shape: f32[16,32], index: 3, kind: output, shape index: {}]  }
   0x1   :  { %v19_v0 = vld [vmem:[%s186_s1 + $0x18] sm:$0xff]  ;;  %v18_v1 = vld [vmem:[%s186_s1 + $0x10] sm:$0xff]  ;;  %v14_v2 = vld [vmem:[%s187_s0] sm:$0xff] }
   0x2   :  { %124 = vmatprep.subr.mxu0 %v19_v0  ;;  %v17_v3 = vld [vmem:[%s186_s1 + $0x8] sm:$0xff]  ;;  %132 = vmatprep.mubr.msk.f32.mxu0 %vm27_vm0, %v14_v2  ;;  %v16_v4 = vld [vmem:[%s186_s1] sm:$0xff] }
   0x3   :  { %125 = vmatpush3.msra.mxu0 %v19_v0  ;;  %v15_v5 = vld [vmem:[%s187_s0 + $0x8] sm:$0xff]  ;;  %v115_v6 = vld [vmem:[%s188_s2] ss:$0 sm:$0xff] }
   0x4   :  { %126 = vmatprep.subr.mxu0 %v18_v1 }
   0x5   :  { %127 = vmatpush3.msra.mxu0 %v18_v1 }
   0x6   :  { %128 = vmatprep.subr.mxu0 %v17_v3 }
   0x7   :  { %129 = vmatpush3.msra.mxu0 %v17_v3 }
   0x8   :  { %130 = vmatprep.subr.mxu0 %v16_v4 }
   0x9   :  { %131 = vmatpush3.msra.mxu0 %v16_v4 }
   0xa   :  { %133 = vmatmul.mubr.msk.f32.vlgmr.msra.gmra.mxu0 %vm27_vm0, %v15_v5 }
  0xca   :  { %v134_v7 = vpop.f32.mrf.mxu0 }
  0xcb   :  { %v106_v8 = vadd.f32 %v134_v7, %v115_v6 }
  0xcc   :  { %v100_v9 = vpop.f32.mrf.mxu0 }
  0xcd   :  { %110 = vst.msk [vmem:[%s189_s3 + $0x8] sm:$0xff] %vm27_vm0, %v106_v8  ;;  %v101_v10 = vadd.f32 %v115_v6, %v100_v9 }
  0xcf   :  { %109 = vst.msk [vmem:[%s189_s3] sm:$0xff] %vm27_vm0, %v101_v10 }

// kernel: transducer_forward.7
= control target key start
LH: loop header
LB: loop body
LE: loop exit
PB: predicated region body
PF: predicated region fallthrough
CT: control target
= control target key end

     0   :  { %vm27_vm0 = vcmask 261120   ;;  %s192_s1 = inlined_call_operand.vmem [shape: f32[32,32], index: 1, kind: input, shape index: {}]   ;;  %s193_s0 = inlined_call_operand.vmem [shape: f32[16,32], index: 0, kind: input, shape index: {}]   ;;  %s194_s2 = inlined_call_operand.vmem [shape: f32[1,32], index: 2, kind: input, shape index: {}]   ;;  %s195_s3 = inlined_call_operand.vmem [shape: f32[16,32], index: 3, kind: output, shape index: {}]  }
   0x1   :  { %v19_v0 = vld [vmem:[%s192_s1 + $0x18] sm:$0xff]  ;;  %v18_v1 = vld [vmem:[%s192_s1 + $0x10] sm:$0xff]  ;;  %v14_v2 = vld [vmem:[%s193_s0] sm:$0xff] }
   0x2   :  { %126 = vmatprep.subr.mxu0 %v19_v0  ;;  %v17_v3 = vld [vmem:[%s192_s1 + $0x8] sm:$0xff]  ;;  %134 = vmatprep.mubr.msk.f32.mxu0 %vm27_vm0, %v14_v2  ;;  %v16_v4 = vld [vmem:[%s192_s1] sm:$0xff] }
   0x3   :  { %127 = vmatpush3.msra.mxu0 %v19_v0  ;;  %v15_v5 = vld [vmem:[%s193_s0 + $0x8] sm:$0xff]  ;;  %v117_v6 = vld [vmem:[%s194_s2] ss:$0 sm:$0xff] }
   0x4   :  { %128 = vmatprep.subr.mxu0 %v18_v1 }
   0x5   :  { %129 = vmatpush3.msra.mxu0 %v18_v1 }
   0x6   :  { %130 = vmatprep.subr.mxu0 %v17_v3 }
   0x7   :  { %131 = vmatpush3.msra.mxu0 %v17_v3 }
   0x8   :  { %132 = vmatprep.subr.mxu0 %v16_v4 }
   0x9   :  { %133 = vmatpush3.msra.mxu0 %v16_v4 }
   0xa   :  { %135 = vmatmul.mubr.msk.f32.vlgmr.msra.gmra.mxu0 %vm27_vm0, %v15_v5 }
  0xca   :  { %v136_v7 = vpop.f32.mrf.mxu0 }
  0xcb   :  { %v106_v8 = vadd.f32 %v136_v7, %v117_v6 }
  0xcc   :  { %v100_v9 = vpop.f32.mrf.mxu0 }
  0xcd   :  { %137 = vtanh.f32 %v106_v8  ;;  %v101_v10 = vadd.f32 %v117_v6, %v100_v9 }
  0xcf   :  { %139 = vtanh.f32 %v101_v10 }
  0xda   :  { %v138_v11 = vpop.eup %137 }
  0xdb   :  { %112 = vst.msk [vmem:[%s195_s3 + $0x8] sm:$0xff] %vm27_vm0, %v138_v11 }
  0xdc   :  { %v140_v12 = vpop.eup %139 }
  0xdd   :  { %111 = vst.msk [vmem:[%s195_s3] sm:$0xff] %vm27_vm0, %v140_v12 }

// kernel: transducer_forward.10
= control target key start
LH: loop header
LB: loop body
LE: loop exit
PB: predicated region body
PF: predicated region fallthrough
CT: control target
= control target key end

     0   :  { %s1126_s0 = inlined_call_operand.vmem [shape: s32[2,5], index: 0, kind: input, shape index: {}]   ;;  %s1127_s1 = inlined_call_operand.vmem [shape: f32[2,8,32], index: 1, kind: input, shape index: {}]   ;;  %s1128_s2 = inlined_call_operand.vmem [shape: f32[2,5,32], index: 2, kind: input, shape index: {}]   ;;  %s1129_s3 = inlined_call_operand.vmem [shape: f32[32,16], index: 3, kind: input, shape index: {}]   ;;  %s1130_s4 = inlined_call_operand.vmem [shape: f32[1,16], index: 4, kind: input, shape index: {}]   ;;  %s1131_s5 = inlined_call_operand.vmem [shape: f32[2,1,40,1], index: 5, kind: output, shape index: {0}]   ;;  %s1132_s6 = inlined_call_operand.vmem [shape: f32[2,1,40,1], index: 6, kind: output, shape index: {1}]  }
   0x1   :  { %s12_s23 = sshll.u32 %s1126_s0, 4  ;;  %s13_s23 = int_to_ptr.vmem [resolvable:$true] %s12_s23 }
   0x2   :  { %s875_s24 = scalar_lea.vmem %s13_s23, 32  ;;  %p880_p1 = scmp.lt.s32.totalorder %s13_s23, %s13_s23 }
   0x3   :  { %p876_p0 = scmp.ne.s32.totalorder %s13_s23, %s875_s24  ;;  %p881_p2 = scmp.lt.s32.totalorder %s875_s24, %s875_s24 }
   0x5   :  { %p882_p3 = por %p881_p2, %p880_p1 }
   0x7   :  { %p883_p4 = pnand %p882_p3, %p876_p0 }
   0x9   :  { %886 = shalt.err (!%p883_p4)  }
   0xa   :  { %s913_s25 = smov [#allocation5]  }
   0xb   :  { %15 = dma.vmem_to_smem %s13_s23, 32, %s913_s25, [#allocation4] }
   0xc   :  { %899 = dma.done.wait [#allocation4], 32 }
   0xd   :  { %900 = vsyncadd [#allocation4], 4294967264 }
   0xe   :  { %17 = sfence }
   0xf   :  { %s955_s26 = smov 0   ;;  %s957_s27 = smov 0  }
  0x10   :  { %s959_s28 = smov 0  }
  0x11 LB: > { %s35_s0 = sadd.s32 1, %s907_s27  ;;  %p760_p5 = scmp.ge.s32.totalorder %s911_s28, 1  ;;  %s911_s28 = sphi %s959_s28, %s23_s28   ;;  %s907_s27 = sphi %s957_s27, %s1134_s27   ;;  %s903_s26 = sphi %s955_s26, %s1133_s26  }
  0x12   : > { %p37_p6 = scmp.ge.s32.totalorder %s35_s0, 2  ;;  %p226_p7 = scmp.lt.s32.totalorder %s911_s28, 3 }
  0x14   : > { %s1136_s0 = smov (%p37_p6, %s35_s0), 0  ;;  %p227_p8 = pnand %p760_p5, %p226_p7 }
  0x15   : > { %p273_p9 = scmp.lt.s32.totalorder (!%p227_p8), %s903_s26, 1  ;;  %s765_s23 = sshll.u32 (!%p227_p8), %s903_s26, 7 }
  0x16   : > { %230 = sbr.rel (%p227_p8) target bundleno = 780 (0x30c), region = 36  ;;  %s324_s24 = sadd.s32 (!%p227_p8), 1, %s765_s23 }
  0x17   : > { %s325_s25 = sld [smem:[#allocation5 + %s324_s24]] (!%p227_p8)  ;;  %s335_s29 = sadd.s32 (!%p227_p8), 2, %s765_s23 }
  0x18   : > { %s336_s30 = sld [smem:[#allocation5 + %s335_s29]] (!%p227_p8)  ;;  %s346_s7 = sadd.s32 (!%p227_p8), 3, %s765_s23 }
  0x19   : > { %s347_s8 = sld [smem:[#allocation5 + %s346_s7]] (!%p227_p8)  ;;  %s357_s10 = sadd.s32 (!%p227_p8), 4, %s765_s23 }
  0x1a   : > { %s358_s11 = sld [smem:[#allocation5 + %s357_s10]] (!%p227_p8) }
  0x1b   : > { %v369_v0 = vld [vmem:[%s1129_s3 + $0x18] sm:$0xff]  ;;  %v304_v1 = vlaneseq  ;;  %v914_v2 = vmov 0.0   ;;  %v368_v3 = vld [vmem:[%s1129_s3 + $0x10] sm:$0xff]  ;;  %s985_s9 = scalar_select %p273_p9, %s903_s26, 1  ;;  %v367_v5 = vld [vmem:[%s1129_s3 + $0x8] sm:$0xff]  ;;  %vm915_vm0 = vmmov 0  }
  0x1c   : > { %783 = vmatprep.subr.mxu0 %v914_v2  ;;  %806 = vmatprep.subr.mxu1 %v914_v2  ;;  %v366_v10 = vld [vmem:[%s1129_s3] sm:$0xff]  ;;  %vm310_vm1 = vcmask 261120   ;;  %vm482_vm2 = vcmask 130048   ;;  %vm315_vm3 = vcmask 7168   ;;  %v916_v56 = vmov 0   ;;  %s313_s26 = sld [smem:[#allocation5 + %s765_s23]] }
  0x1d   : > { %784 = vmatpush3.msra.mxu0 %v369_v0  ;;  %810 = vmatpush3.msra.mxu1 %v369_v0  ;;  %v305_v4 = vshrl.u32 %v304_v1, 7  ;;  %s761_s12 = sshll.u32 %s985_s9, 3  ;;  %v766_v34 = vld [vmem:[%s1130_s4] ss:$0 sm:$0xff]  ;;  %v326_v55 = vstv %s325_s25 }
  0x1e   : > { %785 = vmatprep.subr.mxu0 %v914_v2  ;;  %807 = vmatprep.subr.mxu1 %v914_v2  ;;  %s279_s17 = scalar_lea.vmem %s1127_s1, %s761_s12  ;;  %s283_s20 = scalar_lea.vmem %s1128_s2, %s761_s12  ;;  %327 = vst.msk [vmem:[#allocation3 + $0x8] sm:$0xff] %vm315_vm3, %v326_v55  ;;  %v337_v57 = vstv %s336_s30 }
  0x1f   : > { %786 = vmatpush3.msra.mxu0 %v368_v3  ;;  %811 = vmatpush3.msra.mxu1 %v368_v3  ;;  %v306_v6 = vsub.s32 0, %v305_v4  ;;  %v319_v7 = vsub.s32 1, %v305_v4  ;;  %v341_v8 = vsub.s32 3, %v305_v4  ;;  %v330_v9 = vsub.s32 2, %v305_v4  ;;  %v302_v12 = vld [vmem:[%s279_s17] sm:$0xff]  ;;  %338 = vst.msk [vmem:[#allocation3 + $0x10] sm:$0xff] %vm315_vm3, %v337_v57 }
  0x20   : > { %787 = vmatprep.subr.mxu0 %v914_v2  ;;  %791 = vmatprep.mubr.msk.f32.mxu0 %vm915_vm0, %v914_v2  ;;  %v352_v11 = vsub.s32 4, %v305_v4  ;;  %v303_v13 = vld [vmem:[%s283_s20] sm:$0x1f]  ;;  %v348_v58 = vstv %s347_s8  ;;  %v359_v60 = vstv %s358_s11  ;;  %s814_s12 = smul.u32 40, %s985_s9 }
  0x21   : > { %788 = vmatpush3.msra.mxu0 %v367_v5  ;;  %808 = vmatprep.subr.mxu1 %v914_v2  ;;  %v307_v14 = vrot.slane %v303_v13, %v306_v6  ;;  %v320_v15 = vrot.slane %v303_v13, %v319_v7  ;;  %v342_v16 = vrot.slane %v303_v13, %v341_v8 }
  0x22   : > { %789 = vmatprep.subr.mxu0 %v914_v2  ;;  %812 = vmatpush3.msra.mxu1 %v367_v5  ;;  %v331_v17 = vrot.slane %v303_v13, %v330_v9  ;;  %v353_v18 = vrot.slane %v303_v13, %v352_v11  ;;  %349 = vst.msk [vmem:[#allocation3 + $0x18] sm:$0xff] %vm315_vm3, %v348_v58  ;;  %v314_v59 = vstv %s313_s26  ;;  %360 = vst.msk [vmem:[#allocation3 + $0x20] sm:$0xff] %vm315_vm3, %v359_v60  ;;  %s1081_s15 = scalar_lea.vmem %s1131_s5, %s814_s12  ;;  %s301_s18 = scalar_lea.vmem %s1132_s6, %s814_s12 }
  0x23   : > { %790 = vmatpush3.msra.mxu0 %v366_v10  ;;  %809 = vmatprep.subr.mxu1 %v914_v2  ;;  %v308_v19 = vadd.f32 %v307_v14, %v302_v12  ;;  %v321_v20 = vadd.f32 %v320_v15, %v302_v12  ;;  %v343_v21 = vadd.f32 %v342_v16, %v302_v12 }
  0x24   : > { %813 = vmatpush3.msra.mxu1 %v366_v10  ;;  %800 = vmatprep.mubr.msk.f32.mxu1 %vm915_vm0, %v914_v2  ;;  %v332_v22 = vadd.f32 %v331_v17, %v302_v12  ;;  %v354_v23 = vadd.f32 %v353_v18, %v302_v12  ;;  %316 = vst.msk [vmem:[#allocation3] sm:$0xff] %vm315_vm3, %v314_v59 }
  0x25   : > { %845 = vtanh.f32 %v308_v19  ;;  %844 = vset.pattern.permute.xlu1 %v916_v56  ;;  %843 = vset.pattern.permute.xlu0 %v916_v56  ;;  %v556_v13 = vld [vmem:[#allocation3 + $0x8] sm:$0xff] }
  0x26   : > { %847 = vtanh.f32 %v321_v20  ;;  %v557_v15 = vld [vmem:[#allocation3 + $0x10] sm:$0xff] }
  0x27   : > { %849 = vtanh.f32 %v343_v21 }
  0x28   : > { %851 = vtanh.f32 %v332_v22 }
  0x29   : > { %853 = vtanh.f32 %v354_v23  ;;  %v558_v16 = vld [vmem:[#allocation3 + $0x18] sm:$0xff] }
  0x2b   : > { %v555_v18 = vld [vmem:[#allocation3] sm:$0xff] }
  0x32   : > { %v846_v24 = vpop.eup %845 }
  0x33   : > { %v848_v25 = vpop.eup %847  ;;  %311 = vst.msk [vmem:[#allocation2] sm:$0xff] %vm310_vm1, %v846_v24 }
  0x34   : > { %v850_v26 = vpop.eup %849  ;;  %323 = vst.msk [vmem:[#allocation2 + $0x8] sm:$0xff] %vm310_vm1, %v848_v25 }
  0x35   : > { %v852_v27 = vpop.eup %851  ;;  %345 = vst.msk [vmem:[#allocation2 + $0x18] sm:$0xff] %vm310_vm1, %v850_v26 }
  0x36   : > { %v854_v28 = vpop.eup %853  ;;  %334 = vst.msk [vmem:[#allocation2 + $0x10] sm:$0xff] %vm310_vm1, %v852_v27  ;;  %v559_v27 = vld [vmem:[#allocation3 + $0x20] sm:$0xff] }
  0x37   : > { %356 = vst.msk [vmem:[#allocation2 + $0x20] sm:$0xff] %vm310_vm1, %v854_v28 }
  0x3a   : > { %v361_v29 = vld [vmem:[#allocation2] sm:$0xff] }
  0x3b   : > { %792 = vmatmul.mubr.msk.f32.vlgmr.msra.gmra.mxu0 %vm310_vm1, %v361_v29  ;;  %v362_v30 = vld [vmem:[#allocation2 + $0x8] sm:$0xff] }
  0x3c   : > { %794 = vmatprep.mubr.msk.f32.mxu0 %vm915_vm0, %v914_v2  ;;  %v364_v31 = vld [vmem:[#allocation2 + $0x18] sm:$0xff] }
  0x3d   : > { %801 = vmatmul.mubr.msk.f32.vlgmr.msra.gmra.mxu1 %vm310_vm1, %v364_v31  ;;  %v363_v33 = vld [vmem:[#allocation2 + $0x10] sm:$0xff] }
  0x3e   : > { %803 = vmatprep.mubr.msk.f32.mxu1 %vm915_vm0, %v914_v2  ;;  %v365_v32 = vld [vmem:[#allocation2 + $0x20] sm:$0xff] }
  0x3f   : > { %795 = vmatmul.mubr.msk.f32.gmra.mxu0 %vm310_vm1, %v362_v30 }
  0x40   : > { %797 = vmatprep.mubr.msk.f32.mxu0 %vm915_vm0, %v914_v2 }
  0x41   : > { %804 = vmatmul.mubr.msk.f32.gmra.mxu1 %vm310_vm1, %v365_v32 }
  0x43   : > { %798 = vmatmul.mubr.msk.f32.gmra.mxu0 %vm310_vm1, %v363_v33 }
  0xfb   : > { %v458_v35 = vpop.f32.mrf.mxu0 }
  0xfc   : > { %v1030_v36 = vadd.f32 %v766_v34, %v458_v35 }
  0xfd   : > { %v793_v37 = vpop.f32.mrf.mxu0  ;;  %v473_v38 = vpop.f32.mrf.mxu1 }
  0xfe   : > { %v483_v39 = vsel %vm482_vm2, %v1030_v36, -inf  ;;  %v1040_v49 = vadd.f32 %v766_v34, %v473_v38  ;;  %v554_v37 = vand.u32 127, %v304_v1 }
  0xff   : > { %484 = vmax.xlane.f32.xlu0 %v483_v39  ;;  %v463_v40 = vpop.f32.mrf.mxu0  ;;  %v802_v41 = vpop.f32.mrf.mxu1 }
 0x100   : > { %v1034_v42 = vadd.f32 %v766_v34, %v463_v40  ;;  %v492_v54 = vsel %vm482_vm2, %v1040_v49, -inf }
 0x101   : > { %v796_v43 = vpop.f32.mrf.mxu0  ;;  %v478_v44 = vpop.f32.mrf.mxu1 }
 0x102   : > { %v1036_v45 = vadd.f32 %v766_v34, %v478_v44  ;;  %v486_v46 = vsel %vm482_vm2, %v1034_v42, -inf }
 0x103   : > { %487 = vmax.xlane.f32.xlu0 %v486_v46  ;;  %v468_v47 = vpop.f32.mrf.mxu0  ;;  %v805_v48 = vpop.f32.mrf.mxu1 }
 0x104   : > { %v1042_v50 = vadd.f32 %v766_v34, %v468_v47  ;;  %v495_v51 = vsel %vm482_vm2, %v1036_v45, -inf }
 0x105   : > { %v799_v52 = vpop.f32.mrf.mxu0 }
 0x106   : > { %v489_v53 = vsel %vm482_vm2, %v1042_v50, -inf }
 0x107   : > { %496 = vmax.xlane.f32.xlu0 %v495_v51  ;;  %490 = vmax.xlane.f32.xlu1 %v489_v53 }
 0x10b   : > { %493 = vmax.xlane.f32.xlu1 %v492_v54 }
 0x188   : > { %v485_v61 = vpop.xlane.xlu0 %484 }
 0x189   : > { %v498_v62 = vsub.f32 %v1030_v36, %v485_v61 }
 0x18b   : > { %v503_v63 = vmul.f32 1.442695, %v498_v62 }
 0x18c   : > { %v1057_v0 = vpop.xlane.xlu0 %487 }
 0x18d   : > { %855 = vpow2.f32 %v503_v63  ;;  %v499_v3 = vsub.f32 %v1034_v42, %v1057_v0 }
 0x18f   : > { %v505_v6 = vmul.f32 1.442695, %v499_v3 }
 0x190   : > { %v1059_v2 = vpop.xlane.xlu1 %490  ;;  %v1067_v17 = vpop.xlane.xlu0 %496 }
 0x191   : > { %v502_v19 = vsub.f32 %v1036_v45, %v1067_v17  ;;  %v500_v21 = vsub.f32 %v1042_v50, %v1059_v2 }
 0x193   : > { %v511_v20 = vmul.f32 1.442695, %v502_v19  ;;  %v507_v22 = vmul.f32 1.442695, %v500_v21 }
 0x194   : > { %v494_v4 = vpop.xlane.xlu1 %493 }
 0x195   : > { %v501_v5 = vsub.f32 %v1040_v49, %v494_v4 }
 0x197   : > { %v509_v7 = vmul.f32 1.442695, %v501_v5 }
 0x199   : > { %857 = vpow2.f32 %v509_v7 }
 0x19a   : > { %v856_v8 = vpop.eup %855  ;;  %859 = vpow2.f32 %v505_v6 }
 0x19b   : > { %v513_v9 = vsel %vm482_vm2, %v856_v8, 0.0  ;;  %861 = vpow2.f32 %v511_v20 }
 0x19c   : > { %514 = vadd.xlane.f32.xlu1 %v513_v9  ;;  %863 = vpow2.f32 %v507_v22 }
 0x1a6   : > { %v858_v10 = vpop.eup %857 }
 0x1a7   : > { %v522_v11 = vsel %vm482_vm2, %v858_v10, 0.0  ;;  %v860_v12 = vpop.eup %859 }
 0x1a8   : > { %523 = vadd.xlane.f32.xlu0 %v522_v11  ;;  %v516_v14 = vsel %vm482_vm2, %v860_v12, 0.0  ;;  %v862_v23 = vpop.eup %861 }
 0x1a9   : > { %v525_v24 = vsel %vm482_vm2, %v862_v23, 0.0  ;;  %v864_v25 = vpop.eup %863 }
 0x1aa   : > { %v519_v26 = vsel %vm482_vm2, %v864_v25, 0.0 }
 0x1ac   : > { %517 = vadd.xlane.f32.xlu0 %v516_v14 }
 0x1ad   : > { %564 = vperm.xlu1 %844, %v556_v13  }
 0x1b1   : > { %567 = vperm.xlu1 %844, %v557_v15  }
 0x1b5   : > { %570 = vperm.xlu1 %844, %v558_v16  }
 0x1c2   : > { %561 = vperm.xlu0 %843, %v555_v18  }
 0x1d9   : > { %526 = vadd.xlane.f32.xlu1 %v525_v24 }
 0x1dd   : > { %520 = vadd.xlane.f32.xlu1 %v519_v26 }
 0x1ee   : > { %573 = vperm.xlu1 %844, %v559_v27  }
 0x225   : > { %v515_v28 = vpop.xlane.xlu1 %514 }
 0x226   : > { %865 = vlog2.f32 %v515_v28 }
 0x229   : > { %v565_v33 = vpop.permute.xlu1 %564 }
 0x22a   : > { %vm576_vm6 = vcmp.eq.s32.totalorder %v554_v37, %v565_v33 }
 0x22d   : > { %v568_v38 = vpop.permute.xlu1 %567 }
 0x22e   : > { %vm577_vm7 = vcmp.eq.s32.totalorder %v554_v37, %v568_v38 }
 0x231   : > { %v524_v29 = vpop.xlane.xlu0 %523  ;;  %v571_v46 = vpop.permute.xlu1 %570 }
 0x232   : > { %867 = vlog2.f32 %v524_v29  ;;  %vm578_vm5 = vcmp.eq.s32.totalorder %v554_v37, %v571_v46 }
 0x233   : > { %v866_v30 = vpop.eup %865 }
 0x234   : > { %v529_v31 = vmul.f32 0.6931472, %v866_v30 }
 0x235   : > { %v518_v32 = vpop.xlane.xlu0 %517 }
 0x236   : > { %869 = vlog2.f32 %v518_v32  ;;  %v538_v34 = vadd.f32 %v529_v31, %v485_v61 }
 0x238   : > { %v543_v35 = vsub.f32 %v1030_v36, %v538_v34 }
 0x23a   : > { %548 = vst.msk [vmem:[%s1081_s15] sm:$0xff] %vm315_vm3, %v543_v35 }
 0x23d   : > { %v562_v39 = vpop.permute.xlu0 %561 }
 0x23e   : > { %vm575_vm4 = vcmp.eq.s32.totalorder %v554_v37, %v562_v39 }
 0x23f   : > { %v868_v40 = vpop.eup %867  ;;  %v580_v41 = vsel %vm575_vm4, %v543_v35, 0.0 }
 0x240   : > { %v535_v43 = vmul.f32 0.6931472, %v868_v40  ;;  %v585_v44 = vsel %vm482_vm2, %v580_v41, 0.0 }
 0x241   : > { %586 = vadd.xlane.f32.xlu1 %v585_v44 }
 0x242   : > { %v541_v47 = vadd.f32 %v535_v43, %v494_v4 }
 0x243   : > { %v870_v48 = vpop.eup %869 }
 0x244   : > { %v531_v51 = vmul.f32 0.6931472, %v870_v48  ;;  %v546_v36 = vsub.f32 %v1040_v49, %v541_v47 }
 0x246   : > { %551 = vst.msk [vmem:[%s1081_s15 + $0x18] sm:$0xff] %vm315_vm3, %v546_v36  ;;  %v583_v1 = vsel %vm578_vm5, %v546_v36, 0.0  ;;  %v539_v52 = vadd.f32 %v531_v51, %v1057_v0 }
 0x247   : > { %v594_v53 = vsel %vm482_vm2, %v583_v1, 0.0 }
 0x248   : > { %595 = vadd.xlane.f32.xlu1 %v594_v53  ;;  %v544_v54 = vsub.f32 %v1034_v42, %v539_v52 }
 0x24a   : > { %549 = vst.msk [vmem:[%s1081_s15 + $0x8] sm:$0xff] %vm315_vm3, %v544_v54  ;;  %v581_v55 = vsel %vm576_vm6, %v544_v54, 0.0 }
 0x24b   : > { %v588_v56 = vsel %vm482_vm2, %v581_v55, 0.0 }
 0x24c   : > { %589 = vadd.xlane.f32.xlu0 %v588_v56 }
 0x262   : > { %v527_v49 = vpop.xlane.xlu1 %526 }
 0x263   : > { %871 = vlog2.f32 %v527_v49 }
 0x266   : > { %v521_v57 = vpop.xlane.xlu1 %520 }
 0x267   : > { %873 = vlog2.f32 %v521_v57 }
 0x26a   : > { %v574_v0 = vpop.permute.xlu1 %573 }
 0x26b   : > { %vm579_vm8 = vcmp.eq.s32.totalorder %v554_v37, %v574_v0 }
 0x270   : > { %v872_v58 = vpop.eup %871 }
 0x271   : > { %v537_v59 = vmul.f32 0.6931472, %v872_v58 }
 0x273   : > { %v542_v60 = vadd.f32 %v537_v59, %v1067_v17 }
 0x274   : > { %v874_v61 = vpop.eup %873 }
 0x275   : > { %v533_v42 = vmul.f32 0.6931472, %v874_v61  ;;  %v547_v62 = vsub.f32 %v1036_v45, %v542_v60 }
 0x277   : > { %v540_v63 = vadd.f32 %v533_v42, %v1059_v2  ;;  %552 = vst.msk [vmem:[%s1081_s15 + $0x20] sm:$0xff] %vm315_vm3, %v547_v62  ;;  %v584_v6 = vsel %vm579_vm8, %v547_v62, 0.0 }
 0x278   : > { %v597_v7 = vsel %vm482_vm2, %v584_v6, 0.0 }
 0x279   : > { %v545_v3 = vsub.f32 %v1042_v50, %v540_v63 }
 0x27b   : > { %v582_v4 = vsel %vm577_vm7, %v545_v3, 0.0  ;;  %550 = vst.msk [vmem:[%s1081_s15 + $0x10] sm:$0xff] %vm315_vm3, %v545_v3 }
 0x27c   : > { %v591_v5 = vsel %vm482_vm2, %v582_v4, 0.0 }
 0x27d   : > { %592 = vadd.xlane.f32.xlu1 %v591_v5 }
 0x281   : > { %598 = vadd.xlane.f32.xlu1 %v597_v7 }
 0x2ca   : > { %v587_v45 = vpop.xlane.xlu1 %586 }
 0x2cb   : > { %600 = vst.msk [vmem:[%s301_s18] sm:$0xff] %vm315_vm3, %v587_v45 }
 0x2d1   : > { %v596_v50 = vpop.xlane.xlu1 %595 }
 0x2d2   : > { %603 = vst.msk [vmem:[%s301_s18 + $0x18] sm:$0xff] %vm315_vm3, %v596_v50 }
 0x2d5   : > { %v590_v2 = vpop.xlane.xlu0 %589 }
 0x2d6   : > { %601 = vst.msk [vmem:[%s301_s18 + $0x8] sm:$0xff] %vm315_vm3, %v590_v2 }
 0x306   : > { %v593_v8 = vpop.xlane.xlu1 %592 }
 0x307   : > { %602 = vst.msk [vmem:[%s301_s18 + $0x10] sm:$0xff] %vm315_vm3, %v593_v8 }
 0x30a   : > { %v599_v9 = vpop.xlane.xlu1 %598 }
 0x30b   : > { %604 = vst.msk [vmem:[%s301_s18 + $0x20] sm:$0xff] %vm315_vm3, %v599_v9 }
 0x30c PF: > { %s23_s28 = sadd.s32 1, %s911_s28   ;;  %s1133_s26 = smov %s907_s27 }
 0x30d   : > { %p20_p10 = scmp.ge.s32.totalorder %s23_s28, 4   ;;  %s1134_s27 = smov %s1136_s0 }
 0x30f   :  { %22 = sbr.rel (!%p20_p10) target bundleno = 17 (0x11), region = 81 }

// kernel: custom-call.20
= control target key start
LH: loop header
LB: loop body
LE: loop exit
PB: predicated region body
PF: predicated region fallthrough
CT: control target
= control target key end

     0   :  { %s6_s0 = inlined_call_operand.vmem [shape: f32[11,2,5], index: 0, kind: output, shape index: {}]  }

</bundles_post_ra>
